<compile_context>
chip_gen: v7x
topology: tpu7x:2x2x1
jax: 0.10.0
libtpu: 0.0.40
codegen_flags: <defaults>
</compile_context>

<pallas_src>
import functools

import jax
import jax.numpy as jnp
from jax import lax
from jax.experimental import pallas as pl
from jax.experimental.pallas import tpu as pltpu


def _round_up(n, m):
    return (n + m - 1) // m * m


def _pick_batch_tile(B, HW, C, max_bytes=1 << 19, min_steps=2):
    """Largest batch fold per grid step that (a) keeps the per-step activation
    under `max_bytes`, and (b) leaves >= min_steps grid steps for megacore."""
    best = 1
    for bt in range(1, B + 1):
        if B % bt:
            continue
        if bt * HW * C * 4 > max_bytes:
            continue
        if B > 1 and bt > 1 and (B // bt) < min_steps:
            continue
        best = bt
    return best


def _yblock_kernel(x_ref, w1_ref, b1_ref, w2_ref, b2_ref, w3_ref, b3_ref,
                   ws_ref, o_ref, *, H, W, Bt, identity_skip):
    """One grid step: Bt images, channels-first, spatial flattened onto lanes.

    x_ref : (Bt, Cip, H*W)   input images (channels zero-padded to Cip)
    w*_ref: (Cop, 9*Cin_p)   3x3 conv weights, K index = tap*Cin_p + cin
    b*_ref: (Cop, 1)         biases (f32)
    ws_ref: (Cop, Cip)       1x1 skip conv weight (ignored if identity_skip)
    o_ref : (Bt, Cop, H*W)   output (already NCHW; lane-dense last dim)
    """
    HW = H * W
    N = Bt * HW

    # Fold the Bt batch elements into the lane axis: (Cip, Bt*HW).  Each piece
    # is HW lanes wide (vreg-aligned whenever HW % 128 == 0).
    if Bt == 1:
        x = x_ref[0]
    else:
        x = jnp.concatenate([x_ref[b] for b in range(Bt)], axis=-1)
    x = x.astype(jnp.float32)

    # Per-tap boundary masks (== exact zero padding), shared by all three
    # convs.  Flat lane index i encodes (img, y, x) = (i//HW, (i%HW)//W, i%W).
    lane = lax.broadcasted_iota(jnp.int32, (1, N), 1)
    xw = lane % W            # x coordinate within a row
    jhw = lane % HW          # flat index within an image
    m_left = xw != 0                 # x >= 1       (tap needs x-1)
    m_right = xw != (W - 1)          # x <= W-2     (tap needs x+1)
    m_top = jhw >= W                 # y >= 1       (tap needs y-1)
    m_bot = jhw < (HW - W)           # y <= H-2     (tap needs y+1)

    taps = []                        # (flat shift, validity mask) per tap
    for ky in range(3):
        for kx in range(3):
            sy, sx = ky - 1, kx - 1
            conds = []
            if sy == -1:
                conds.append(m_top)
            elif sy == 1:
                conds.append(m_bot)
            if sx == -1:
                conds.append(m_left)
            elif sx == 1:
                conds.append(m_right)
            valid = None
            for c in conds:
                valid = c if valid is None else (valid & c)
            taps.append((sy * W + sx, valid))

    def conv3x3(a, w_ref, b_ref):
        # a: (Cin, N) f32.  Build the 9-tap im2col operand with lane rolls +
        # masks (no padded scratch, no strided slice copies), then ONE MXU
        # matmul (Co, 9*Cin) x (9*Cin, N) with f32 accumulation.
        pieces = []
        for shift, valid in taps:
            s = a if shift == 0 else pltpu.roll(a, (-shift) % N, axis=1)
            pieces.append(s if valid is None else jnp.where(valid, s, 0.0))
        stacked = jnp.concatenate(pieces, axis=0)              # (9*Cin, N) f32
        acc = jnp.dot(w_ref[...], stacked.astype(w_ref.dtype),
                      preferred_element_type=jnp.float32)      # (Co, N) f32
        return acc + b_ref[...]                                # bias broadcast

    # conv1 -> ReLU -> conv2 -> ReLU -> conv3
    t = jnp.maximum(conv3x3(x, w1_ref, b1_ref), 0.0)
    t = jnp.maximum(conv3x3(t, w2_ref, b2_ref), 0.0)
    t = conv3x3(t, w3_ref, b3_ref)

    # skip: nn.Identity() when i == o, otherwise a bias-free 1x1 conv.
    if identity_skip:
        skip = x
    else:
        skip = jnp.dot(ws_ref[...], x.astype(ws_ref.dtype),
                       preferred_element_type=jnp.float32)

    out = jnp.maximum(t + skip, 0.0)                           # fuse = ReLU

    # Unfold the batch axis back into the leading (NCHW) block dim.
    if Bt == 1:
        o_ref[0] = out.astype(o_ref.dtype)
    else:
        for b in range(Bt):
            o_ref[b] = out[:, b * HW:(b + 1) * HW].astype(o_ref.dtype)


def yblock_forward(x_nchw, params, *, mxu_dtype=jnp.float32):
    """x_nchw: (B, Ci, H, W) f32.  params from make_params.  Returns (B, Co, H, W)."""
    w1, b1, w2, b2, w3, b3, wskip = params
    B, Ci, H, W = x_nchw.shape
    Co = int(b1.shape[0])
    HW = H * W
    Cip = _round_up(Ci, 8)      # pad channels to the f32 sublane tile
    Cop = _round_up(Co, 8)
    identity_skip = wskip is None
    if identity_skip and Ci != Co:
        raise ValueError("identity skip requires Ci == Co")

    Bt = _pick_batch_tile(B, HW, max(Cip, Cop))

    # ---- reorganize parameters into MXU-friendly matrices (tiny one-time ops) ----
    def prep_w(w, cin, cinp):
        co = w.shape[0]
        wm = jnp.transpose(w, (0, 2, 3, 1)).reshape(co, 9, cin)   # (Co, tap, Cin)
        wm = jnp.pad(wm, ((0, Cop - co), (0, 0), (0, cinp - cin)))
        return wm.reshape(Cop, 9 * cinp).astype(mxu_dtype)

    def prep_b(b):
        return jnp.pad(b, (0, Cop - b.shape[0])).reshape(Cop, 1).astype(jnp.float32)

    w1m = prep_w(w1, Ci, Cip)
    w2m = prep_w(w2, Co, Cop)
    w3m = prep_w(w3, Co, Cop)
    b1m, b2m, b3m = prep_b(b1), prep_b(b2), prep_b(b3)
    if identity_skip:
        wsm = jnp.zeros((Cop, Cip), mxu_dtype)          # placeholder, unused
    else:
        wsm = jnp.pad(wskip, ((0, Cop - Co), (0, Cip - Ci))).astype(mxu_dtype)

    # ---- input: keep NCHW, flatten spatial onto lanes, zero-pad channels ----
    x = jnp.pad(x_nchw.astype(jnp.float32),
                ((0, 0), (0, Cip - Ci), (0, 0), (0, 0))).reshape(B, Cip, HW)

    kernel = functools.partial(_yblock_kernel, H=H, W=W, Bt=Bt,
                               identity_skip=identity_skip)

    out = pl.pallas_call(
        kernel,
        out_shape=jax.ShapeDtypeStruct((B, Cop, HW), jnp.float32),
        grid=(B // Bt,),
        in_specs=[
            pl.BlockSpec((Bt, Cip, HW), lambda g: (g, 0, 0)),
            pl.BlockSpec((Cop, 9 * Cip), lambda g: (0, 0)),
            pl.BlockSpec((Cop, 1), lambda g: (0, 0)),
            pl.BlockSpec((Cop, 9 * Cop), lambda g: (0, 0)),
            pl.BlockSpec((Cop, 1), lambda g: (0, 0)),
            pl.BlockSpec((Cop, 9 * Cop), lambda g: (0, 0)),
            pl.BlockSpec((Cop, 1), lambda g: (0, 0)),
            pl.BlockSpec((Cop, Cip), lambda g: (0, 0)),
        ],
        out_specs=pl.BlockSpec((Bt, Cop, HW), lambda g: (g, 0, 0)),
        compiler_params=pltpu.CompilerParams(
            dimension_semantics=("parallel",)),   # independent batch steps
    )(x, w1m, b1m, w2m, b2m, w3m, b3m, wsm)

    # Output is already NCHW -- just reshape and drop the padded channels.
    return out.reshape(B, Cop, H, W)[:, :Co]


def make_params(key, ci, co):
    """Synthetic params in PyTorch layout: conv weight (out, in, 3, 3), bias (out,)."""
    ks = jax.random.split(key, 7)

    def conv_w(k, cin, cout, ksz):
        scale = 1.0 / jnp.sqrt(cin * ksz * ksz)
        return jax.random.uniform(k, (cout, cin, ksz, ksz), jnp.float32, -scale, scale)

    def conv_b(k, cin, cout, ksz):
        scale = 1.0 / jnp.sqrt(cin * ksz * ksz)
        return jax.random.uniform(k, (cout,), jnp.float32, -scale, scale)

    w1 = conv_w(ks[0], ci, co, 3); b1 = conv_b(ks[1], ci, co, 3)
    w2 = conv_w(ks[2], co, co, 3); b2 = conv_b(ks[3], co, co, 3)
    w3 = conv_w(ks[4], co, co, 3); b3 = conv_b(ks[5], co, co, 3)
    if ci != co:
        scale = 1.0 / jnp.sqrt(float(ci))
        wskip = jax.random.uniform(ks[6], (co, ci), jnp.float32, -scale, scale)
    else:
        wskip = None                     # nn.Identity()
    return (w1, b1, w2, b2, w3, b3, wskip)


def yblock_reference(x, params):
    """Pure-JAX reference (lax conv, highest precision) matching the module."""
    w1, b1, w2, b2, w3, b3, wskip = params
    dn = ("NCHW", "OIHW", "NCHW")

    def conv3(x, w, b):
        y = lax.conv_general_dilated(x, w, (1, 1), "SAME", dimension_numbers=dn,
                                     precision=lax.Precision.HIGHEST)
        return y + b[None, :, None, None]

    t = jax.nn.relu(conv3(x, w1, b1))
    t = jax.nn.relu(conv3(t, w2, b2))
    t = conv3(t, w3, b3)
    if wskip is None:
        skip = x
    else:
        skip = jnp.einsum("oi,bihw->bohw", wskip, x,
                          precision=lax.Precision.HIGHEST)
    return jax.nn.relu(t + skip)


if __name__ == "__main__":
    key = jax.random.PRNGKey(0)
    k_x1, k_p1, k_x2, k_p2 = jax.random.split(key, 4)

    # Case 1: i != o (real 1x1-conv skip), f32 MXU operands.
    B, Ci, Co, H, W = 2, 4, 8, 16, 16
    x = jax.random.normal(k_x1, (B, Ci, H, W), jnp.float32)
    params = make_params(k_p1, Ci, Co)
    out = jax.block_until_ready(yblock_forward(x, params))
    ref = yblock_reference(x, params)
    assert out.shape == (B, Co, H, W), out.shape
    err = float(jnp.max(jnp.abs(out - ref)))
    assert err < 1e-4, err

    # Case 2: i == o (identity skip), bf16 MXU operands (f32 accumulation),
    # batch folded 2-per-step (exercises the Bt > 1 path).
    B2, C2 = 4, 8
    x2 = jax.random.normal(k_x2, (B2, C2, H, W), jnp.float32)
    params2 = make_params(k_p2, C2, C2)
    out2 = jax.block_until_ready(
        yblock_forward(x2, params2, mxu_dtype=jnp.bfloat16))
    ref2 = yblock_reference(x2, params2)
    assert out2.shape == (B2, C2, H, W), out2.shape
    err2 = float(jnp.max(jnp.abs(out2 - ref2)))
    tol2 = 1e-2 + 3e-2 * float(jnp.max(jnp.abs(ref2)))
    assert err2 < tol2, (err2, tol2)

    print("KERNEL_OK")
</pallas_src>

<mosaic_0001>
module attributes {stable_mosaic.version = 11 : i64} {
  func.func @_yblock_kernel(%arg0: i32, %arg1: memref<1x8x256xf32, #tpu.memory_space<vmem>>, %arg2: memref<8x72xf32, #tpu.memory_space<vmem>>, %arg3: memref<8x1xf32, #tpu.memory_space<vmem>>, %arg4: memref<8x72xf32, #tpu.memory_space<vmem>>, %arg5: memref<8x1xf32, #tpu.memory_space<vmem>>, %arg6: memref<8x72xf32, #tpu.memory_space<vmem>>, %arg7: memref<8x1xf32, #tpu.memory_space<vmem>>, %arg8: memref<8x8xf32, #tpu.memory_space<vmem>>, %arg9: memref<1x8x256xf32, #tpu.memory_space<vmem>>) attributes {dimension_semantics = [#tpu.dimension_semantics<parallel>], iteration_bounds = array<i64: 2>, scalar_prefetch = 0 : i64, scratch_operands = 0 : i64, tpu.core_type = #tpu.core_type<tc>, window_params = [{transform_indices = @transform_0, window_bounds = array<i64: 1, 8, 256>}, {pipeline_mode = #tpu.pipeline_mode<synchronous>, transform_indices = @transform_1, window_bounds = array<i64: 8, 72>}, {pipeline_mode = #tpu.pipeline_mode<synchronous>, transform_indices = @transform_2, window_bounds = array<i64: 8, 1>}, {pipeline_mode = #tpu.pipeline_mode<synchronous>, transform_indices = @transform_3, window_bounds = array<i64: 8, 72>}, {pipeline_mode = #tpu.pipeline_mode<synchronous>, transform_indices = @transform_4, window_bounds = array<i64: 8, 1>}, {pipeline_mode = #tpu.pipeline_mode<synchronous>, transform_indices = @transform_5, window_bounds = array<i64: 8, 72>}, {pipeline_mode = #tpu.pipeline_mode<synchronous>, transform_indices = @transform_6, window_bounds = array<i64: 8, 1>}, {pipeline_mode = #tpu.pipeline_mode<synchronous>, transform_indices = @transform_7, window_bounds = array<i64: 8, 8>}, {transform_indices = @transform_8, window_bounds = array<i64: 1, 8, 256>}]} {
    %c0 = arith.constant 0 : index
    %c0_0 = arith.constant 0 : index
    %c0_1 = arith.constant 0 : index
    %0 = vector.load %arg1[%c0, %c0_0, %c0_1] : memref<1x8x256xf32, #tpu.memory_space<vmem>>, vector<1x8x256xf32>
    %1 = vector.shape_cast %0 : vector<1x8x256xf32> to vector<8x256xf32>
    %2 = tpu.iota {dimensions = array<i32: 1>} : vector<1x256xi32>
    %c16_i32 = arith.constant 16 : i32
    %c0_i32 = arith.constant 0 : i32
    %3 = arith.cmpi eq, %c16_i32, %c0_i32 : i32
    %c1_i32 = arith.constant 1 : i32
    %4 = arith.select %3, %c1_i32, %c16_i32 : i32
    %5 = vector.broadcast %4 : i32 to vector<1x256xi32>
    %6 = arith.remsi %2, %5 : vector<1x256xi32>
    %c0_i32_2 = arith.constant 0 : i32
    %7 = vector.broadcast %c0_i32_2 : i32 to vector<1x256xi32>
    %8 = arith.cmpi ne, %6, %7 : vector<1x256xi32>
    %c0_i32_3 = arith.constant 0 : i32
    %9 = vector.broadcast %c0_i32_3 : i32 to vector<1x256xi32>
    %10 = arith.cmpi slt, %6, %9 : vector<1x256xi32>
    %c0_i32_4 = arith.constant 0 : i32
    %11 = arith.cmpi slt, %4, %c0_i32_4 : i32
    %12 = vector.broadcast %11 : i1 to vector<1x256xi1>
    %13 = vector.broadcast %12 : vector<1x256xi1> to vector<1x256xi1>
    %14 = arith.xori %10, %13 : vector<1x256xi1>
    %15 = arith.andi %14, %8 : vector<1x256xi1>
    %16 = vector.broadcast %4 : i32 to vector<1x256xi32>
    %17 = arith.addi %6, %16 : vector<1x256xi32>
    %18 = arith.select %15, %17, %6 : vector<1x256xi1>, vector<1x256xi32>
    %c256_i32 = arith.constant 256 : i32
    %c0_i32_5 = arith.constant 0 : i32
    %19 = arith.cmpi eq, %c256_i32, %c0_i32_5 : i32
    %c1_i32_6 = arith.constant 1 : i32
    %20 = arith.select %19, %c1_i32_6, %c256_i32 : i32
    %21 = vector.broadcast %20 : i32 to vector<1x256xi32>
    %22 = arith.remsi %2, %21 : vector<1x256xi32>
    %c0_i32_7 = arith.constant 0 : i32
    %23 = vector.broadcast %c0_i32_7 : i32 to vector<1x256xi32>
    %24 = arith.cmpi ne, %22, %23 : vector<1x256xi32>
    %c0_i32_8 = arith.constant 0 : i32
    %25 = vector.broadcast %c0_i32_8 : i32 to vector<1x256xi32>
    %26 = arith.cmpi slt, %22, %25 : vector<1x256xi32>
    %c0_i32_9 = arith.constant 0 : i32
    %27 = arith.cmpi slt, %20, %c0_i32_9 : i32
    %28 = vector.broadcast %27 : i1 to vector<1x256xi1>
    %29 = vector.broadcast %28 : vector<1x256xi1> to vector<1x256xi1>
    %30 = arith.xori %26, %29 : vector<1x256xi1>
    %31 = arith.andi %30, %24 : vector<1x256xi1>
    %32 = vector.broadcast %20 : i32 to vector<1x256xi32>
    %33 = arith.addi %22, %32 : vector<1x256xi32>
    %34 = arith.select %31, %33, %22 : vector<1x256xi1>, vector<1x256xi32>
    %c0_i32_10 = arith.constant 0 : i32
    %35 = vector.broadcast %c0_i32_10 : i32 to vector<1x256xi32>
    %36 = arith.cmpi ne, %18, %35 : vector<1x256xi32>
    %c15_i32 = arith.constant 15 : i32
    %37 = vector.broadcast %c15_i32 : i32 to vector<1x256xi32>
    %38 = arith.cmpi ne, %18, %37 : vector<1x256xi32>
    %c16_i32_11 = arith.constant 16 : i32
    %39 = vector.broadcast %c16_i32_11 : i32 to vector<1x256xi32>
    %40 = arith.cmpi sge, %34, %39 : vector<1x256xi32>
    %c240_i32 = arith.constant 240 : i32
    %41 = vector.broadcast %c240_i32 : i32 to vector<1x256xi32>
    %42 = arith.cmpi slt, %34, %41 : vector<1x256xi32>
    %43 = arith.andi %40, %36 : vector<1x256xi1>
    %44 = arith.andi %40, %38 : vector<1x256xi1>
    %45 = arith.andi %42, %36 : vector<1x256xi1>
    %46 = arith.andi %42, %38 : vector<1x256xi1>
    %c17_i32 = arith.constant 17 : i32
    %47 = tpu.dynamic_rotate %1 by %c17_i32 dim 1 : vector<8x256xf32>, i32 -> vector<8x256xf32>
    %cst = arith.constant 0.000000e+00 : f32
    %48 = vector.shape_cast %43 : vector<1x256xi1> to vector<1x256xi1>
    %49 = vector.broadcast %48 : vector<1x256xi1> to vector<8x256xi1>
    %50 = vector.broadcast %cst : f32 to vector<8x256xf32>
    %51 = arith.select %49, %47, %50 : vector<8x256xi1>, vector<8x256xf32>
    %c16_i32_12 = arith.constant 16 : i32
    %52 = tpu.dynamic_rotate %1 by %c16_i32_12 dim 1 : vector<8x256xf32>, i32 -> vector<8x256xf32>
    %cst_13 = arith.constant 0.000000e+00 : f32
    %53 = vector.shape_cast %40 : vector<1x256xi1> to vector<1x256xi1>
    %54 = vector.broadcast %53 : vector<1x256xi1> to vector<8x256xi1>
    %55 = vector.broadcast %cst_13 : f32 to vector<8x256xf32>
    %56 = arith.select %54, %52, %55 : vector<8x256xi1>, vector<8x256xf32>
    %c15_i32_14 = arith.constant 15 : i32
    %57 = tpu.dynamic_rotate %1 by %c15_i32_14 dim 1 : vector<8x256xf32>, i32 -> vector<8x256xf32>
    %cst_15 = arith.constant 0.000000e+00 : f32
    %58 = vector.shape_cast %44 : vector<1x256xi1> to vector<1x256xi1>
    %59 = vector.broadcast %58 : vector<1x256xi1> to vector<8x256xi1>
    %60 = vector.broadcast %cst_15 : f32 to vector<8x256xf32>
    %61 = arith.select %59, %57, %60 : vector<8x256xi1>, vector<8x256xf32>
    %c1_i32_16 = arith.constant 1 : i32
    %62 = tpu.dynamic_rotate %1 by %c1_i32_16 dim 1 : vector<8x256xf32>, i32 -> vector<8x256xf32>
    %cst_17 = arith.constant 0.000000e+00 : f32
    %63 = vector.shape_cast %36 : vector<1x256xi1> to vector<1x256xi1>
    %64 = vector.broadcast %63 : vector<1x256xi1> to vector<8x256xi1>
    %65 = vector.broadcast %cst_17 : f32 to vector<8x256xf32>
    %66 = arith.select %64, %62, %65 : vector<8x256xi1>, vector<8x256xf32>
    %c255_i32 = arith.constant 255 : i32
    %67 = tpu.dynamic_rotate %1 by %c255_i32 dim 1 : vector<8x256xf32>, i32 -> vector<8x256xf32>
    %cst_18 = arith.constant 0.000000e+00 : f32
    %68 = vector.shape_cast %38 : vector<1x256xi1> to vector<1x256xi1>
    %69 = vector.broadcast %68 : vector<1x256xi1> to vector<8x256xi1>
    %70 = vector.broadcast %cst_18 : f32 to vector<8x256xf32>
    %71 = arith.select %69, %67, %70 : vector<8x256xi1>, vector<8x256xf32>
    %c241_i32 = arith.constant 241 : i32
    %72 = tpu.dynamic_rotate %1 by %c241_i32 dim 1 : vector<8x256xf32>, i32 -> vector<8x256xf32>
    %cst_19 = arith.constant 0.000000e+00 : f32
    %73 = vector.shape_cast %45 : vector<1x256xi1> to vector<1x256xi1>
    %74 = vector.broadcast %73 : vector<1x256xi1> to vector<8x256xi1>
    %75 = vector.broadcast %cst_19 : f32 to vector<8x256xf32>
    %76 = arith.select %74, %72, %75 : vector<8x256xi1>, vector<8x256xf32>
    %c240_i32_20 = arith.constant 240 : i32
    %77 = tpu.dynamic_rotate %1 by %c240_i32_20 dim 1 : vector<8x256xf32>, i32 -> vector<8x256xf32>
    %cst_21 = arith.constant 0.000000e+00 : f32
    %78 = vector.shape_cast %42 : vector<1x256xi1> to vector<1x256xi1>
    %79 = vector.broadcast %78 : vector<1x256xi1> to vector<8x256xi1>
    %80 = vector.broadcast %cst_21 : f32 to vector<8x256xf32>
    %81 = arith.select %79, %77, %80 : vector<8x256xi1>, vector<8x256xf32>
    %c239_i32 = arith.constant 239 : i32
    %82 = tpu.dynamic_rotate %1 by %c239_i32 dim 1 : vector<8x256xf32>, i32 -> vector<8x256xf32>
    %cst_22 = arith.constant 0.000000e+00 : f32
    %83 = vector.shape_cast %46 : vector<1x256xi1> to vector<1x256xi1>
    %84 = vector.broadcast %83 : vector<1x256xi1> to vector<8x256xi1>
    %85 = vector.broadcast %cst_22 : f32 to vector<8x256xf32>
    %86 = arith.select %84, %82, %85 : vector<8x256xi1>, vector<8x256xf32>
    %87 = tpu.concatenate %51, %56, %61, %66, %1, %71, %76, %81, %86 in 0 : vector<8x256xf32>, vector<8x256xf32>, vector<8x256xf32>, vector<8x256xf32>, vector<8x256xf32>, vector<8x256xf32>, vector<8x256xf32>, vector<8x256xf32>, vector<8x256xf32> -> vector<72x256xf32>
    %c0_23 = arith.constant 0 : index
    %c0_24 = arith.constant 0 : index
    %88 = vector.load %arg2[%c0_23, %c0_24] : memref<8x72xf32, #tpu.memory_space<vmem>>, vector<8x72xf32>
    %cst_25 = arith.constant dense<0.000000e+00> : vector<8x256xf32>
    %89 = tpu.matmul %88, %87, %cst_25 {dimension_numbers = #tpu.dot_dimension_numbers<[1], [0], [0], [1], [0, 0, 1, 1], [], []>} : vector<8x72xf32>, vector<72x256xf32>, vector<8x256xf32> -> vector<8x256xf32>
    %c0_26 = arith.constant 0 : index
    %c0_27 = arith.constant 0 : index
    %90 = vector.load %arg3[%c0_26, %c0_27] : memref<8x1xf32, #tpu.memory_space<vmem>>, vector<8x1xf32>
    %91 = vector.broadcast %90 : vector<8x1xf32> to vector<8x256xf32>
    %92 = arith.addf %89, %91 : vector<8x256xf32>
    %cst_28 = arith.constant 0.000000e+00 : f32
    %93 = vector.broadcast %cst_28 : f32 to vector<8x256xf32>
    %94 = arith.maximumf %92, %93 : vector<8x256xf32>
    %c17_i32_29 = arith.constant 17 : i32
    %95 = tpu.dynamic_rotate %94 by %c17_i32_29 dim 1 : vector<8x256xf32>, i32 -> vector<8x256xf32>
    %cst_30 = arith.constant 0.000000e+00 : f32
    %96 = vector.shape_cast %43 : vector<1x256xi1> to vector<1x256xi1>
    %97 = vector.broadcast %96 : vector<1x256xi1> to vector<8x256xi1>
    %98 = vector.broadcast %cst_30 : f32 to vector<8x256xf32>
    %99 = arith.select %97, %95, %98 : vector<8x256xi1>, vector<8x256xf32>
    %c16_i32_31 = arith.constant 16 : i32
    %100 = tpu.dynamic_rotate %94 by %c16_i32_31 dim 1 : vector<8x256xf32>, i32 -> vector<8x256xf32>
    %cst_32 = arith.constant 0.000000e+00 : f32
    %101 = vector.shape_cast %40 : vector<1x256xi1> to vector<1x256xi1>
    %102 = vector.broadcast %101 : vector<1x256xi1> to vector<8x256xi1>
    %103 = vector.broadcast %cst_32 : f32 to vector<8x256xf32>
    %104 = arith.select %102, %100, %103 : vector<8x256xi1>, vector<8x256xf32>
    %c15_i32_33 = arith.constant 15 : i32
    %105 = tpu.dynamic_rotate %94 by %c15_i32_33 dim 1 : vector<8x256xf32>, i32 -> vector<8x256xf32>
    %cst_34 = arith.constant 0.000000e+00 : f32
    %106 = vector.shape_cast %44 : vector<1x256xi1> to vector<1x256xi1>
    %107 = vector.broadcast %106 : vector<1x256xi1> to vector<8x256xi1>
    %108 = vector.broadcast %cst_34 : f32 to vector<8x256xf32>
    %109 = arith.select %107, %105, %108 : vector<8x256xi1>, vector<8x256xf32>
    %c1_i32_35 = arith.constant 1 : i32
    %110 = tpu.dynamic_rotate %94 by %c1_i32_35 dim 1 : vector<8x256xf32>, i32 -> vector<8x256xf32>
    %cst_36 = arith.constant 0.000000e+00 : f32
    %111 = vector.shape_cast %36 : vector<1x256xi1> to vector<1x256xi1>
    %112 = vector.broadcast %111 : vector<1x256xi1> to vector<8x256xi1>
    %113 = vector.broadcast %cst_36 : f32 to vector<8x256xf32>
    %114 = arith.select %112, %110, %113 : vector<8x256xi1>, vector<8x256xf32>
    %c255_i32_37 = arith.constant 255 : i32
    %115 = tpu.dynamic_rotate %94 by %c255_i32_37 dim 1 : vector<8x256xf32>, i32 -> vector<8x256xf32>
    %cst_38 = arith.constant 0.000000e+00 : f32
    %116 = vector.shape_cast %38 : vector<1x256xi1> to vector<1x256xi1>
    %117 = vector.broadcast %116 : vector<1x256xi1> to vector<8x256xi1>
    %118 = vector.broadcast %cst_38 : f32 to vector<8x256xf32>
    %119 = arith.select %117, %115, %118 : vector<8x256xi1>, vector<8x256xf32>
    %c241_i32_39 = arith.constant 241 : i32
    %120 = tpu.dynamic_rotate %94 by %c241_i32_39 dim 1 : vector<8x256xf32>, i32 -> vector<8x256xf32>
    %cst_40 = arith.constant 0.000000e+00 : f32
    %121 = vector.shape_cast %45 : vector<1x256xi1> to vector<1x256xi1>
    %122 = vector.broadcast %121 : vector<1x256xi1> to vector<8x256xi1>
    %123 = vector.broadcast %cst_40 : f32 to vector<8x256xf32>
    %124 = arith.select %122, %120, %123 : vector<8x256xi1>, vector<8x256xf32>
    %c240_i32_41 = arith.constant 240 : i32
    %125 = tpu.dynamic_rotate %94 by %c240_i32_41 dim 1 : vector<8x256xf32>, i32 -> vector<8x256xf32>
    %cst_42 = arith.constant 0.000000e+00 : f32
    %126 = vector.shape_cast %42 : vector<1x256xi1> to vector<1x256xi1>
    %127 = vector.broadcast %126 : vector<1x256xi1> to vector<8x256xi1>
    %128 = vector.broadcast %cst_42 : f32 to vector<8x256xf32>
    %129 = arith.select %127, %125, %128 : vector<8x256xi1>, vector<8x256xf32>
    %c239_i32_43 = arith.constant 239 : i32
    %130 = tpu.dynamic_rotate %94 by %c239_i32_43 dim 1 : vector<8x256xf32>, i32 -> vector<8x256xf32>
    %cst_44 = arith.constant 0.000000e+00 : f32
    %131 = vector.shape_cast %46 : vector<1x256xi1> to vector<1x256xi1>
    %132 = vector.broadcast %131 : vector<1x256xi1> to vector<8x256xi1>
    %133 = vector.broadcast %cst_44 : f32 to vector<8x256xf32>
    %134 = arith.select %132, %130, %133 : vector<8x256xi1>, vector<8x256xf32>
    %135 = tpu.concatenate %99, %104, %109, %114, %94, %119, %124, %129, %134 in 0 : vector<8x256xf32>, vector<8x256xf32>, vector<8x256xf32>, vector<8x256xf32>, vector<8x256xf32>, vector<8x256xf32>, vector<8x256xf32>, vector<8x256xf32>, vector<8x256xf32> -> vector<72x256xf32>
    %c0_45 = arith.constant 0 : index
    %c0_46 = arith.constant 0 : index
    %136 = vector.load %arg4[%c0_45, %c0_46] : memref<8x72xf32, #tpu.memory_space<vmem>>, vector<8x72xf32>
    %cst_47 = arith.constant dense<0.000000e+00> : vector<8x256xf32>
    %137 = tpu.matmul %136, %135, %cst_47 {dimension_numbers = #tpu.dot_dimension_numbers<[1], [0], [0], [1], [0, 0, 1, 1], [], []>} : vector<8x72xf32>, vector<72x256xf32>, vector<8x256xf32> -> vector<8x256xf32>
    %c0_48 = arith.constant 0 : index
    %c0_49 = arith.constant 0 : index
    %138 = vector.load %arg5[%c0_48, %c0_49] : memref<8x1xf32, #tpu.memory_space<vmem>>, vector<8x1xf32>
    %139 = vector.broadcast %138 : vector<8x1xf32> to vector<8x256xf32>
    %140 = arith.addf %137, %139 : vector<8x256xf32>
    %cst_50 = arith.constant 0.000000e+00 : f32
    %141 = vector.broadcast %cst_50 : f32 to vector<8x256xf32>
    %142 = arith.maximumf %140, %141 : vector<8x256xf32>
    %c17_i32_51 = arith.constant 17 : i32
    %143 = tpu.dynamic_rotate %142 by %c17_i32_51 dim 1 : vector<8x256xf32>, i32 -> vector<8x256xf32>
    %cst_52 = arith.constant 0.000000e+00 : f32
    %144 = vector.shape_cast %43 : vector<1x256xi1> to vector<1x256xi1>
    %145 = vector.broadcast %144 : vector<1x256xi1> to vector<8x256xi1>
    %146 = vector.broadcast %cst_52 : f32 to vector<8x256xf32>
    %147 = arith.select %145, %143, %146 : vector<8x256xi1>, vector<8x256xf32>
    %c16_i32_53 = arith.constant 16 : i32
    %148 = tpu.dynamic_rotate %142 by %c16_i32_53 dim 1 : vector<8x256xf32>, i32 -> vector<8x256xf32>
    %cst_54 = arith.constant 0.000000e+00 : f32
    %149 = vector.shape_cast %40 : vector<1x256xi1> to vector<1x256xi1>
    %150 = vector.broadcast %149 : vector<1x256xi1> to vector<8x256xi1>
    %151 = vector.broadcast %cst_54 : f32 to vector<8x256xf32>
    %152 = arith.select %150, %148, %151 : vector<8x256xi1>, vector<8x256xf32>
    %c15_i32_55 = arith.constant 15 : i32
    %153 = tpu.dynamic_rotate %142 by %c15_i32_55 dim 1 : vector<8x256xf32>, i32 -> vector<8x256xf32>
    %cst_56 = arith.constant 0.000000e+00 : f32
    %154 = vector.shape_cast %44 : vector<1x256xi1> to vector<1x256xi1>
    %155 = vector.broadcast %154 : vector<1x256xi1> to vector<8x256xi1>
    %156 = vector.broadcast %cst_56 : f32 to vector<8x256xf32>
    %157 = arith.select %155, %153, %156 : vector<8x256xi1>, vector<8x256xf32>
    %c1_i32_57 = arith.constant 1 : i32
    %158 = tpu.dynamic_rotate %142 by %c1_i32_57 dim 1 : vector<8x256xf32>, i32 -> vector<8x256xf32>
    %cst_58 = arith.constant 0.000000e+00 : f32
    %159 = vector.shape_cast %36 : vector<1x256xi1> to vector<1x256xi1>
    %160 = vector.broadcast %159 : vector<1x256xi1> to vector<8x256xi1>
    %161 = vector.broadcast %cst_58 : f32 to vector<8x256xf32>
    %162 = arith.select %160, %158, %161 : vector<8x256xi1>, vector<8x256xf32>
    %c255_i32_59 = arith.constant 255 : i32
    %163 = tpu.dynamic_rotate %142 by %c255_i32_59 dim 1 : vector<8x256xf32>, i32 -> vector<8x256xf32>
    %cst_60 = arith.constant 0.000000e+00 : f32
    %164 = vector.shape_cast %38 : vector<1x256xi1> to vector<1x256xi1>
    %165 = vector.broadcast %164 : vector<1x256xi1> to vector<8x256xi1>
    %166 = vector.broadcast %cst_60 : f32 to vector<8x256xf32>
    %167 = arith.select %165, %163, %166 : vector<8x256xi1>, vector<8x256xf32>
    %c241_i32_61 = arith.constant 241 : i32
    %168 = tpu.dynamic_rotate %142 by %c241_i32_61 dim 1 : vector<8x256xf32>, i32 -> vector<8x256xf32>
    %cst_62 = arith.constant 0.000000e+00 : f32
    %169 = vector.shape_cast %45 : vector<1x256xi1> to vector<1x256xi1>
    %170 = vector.broadcast %169 : vector<1x256xi1> to vector<8x256xi1>
    %171 = vector.broadcast %cst_62 : f32 to vector<8x256xf32>
    %172 = arith.select %170, %168, %171 : vector<8x256xi1>, vector<8x256xf32>
    %c240_i32_63 = arith.constant 240 : i32
    %173 = tpu.dynamic_rotate %142 by %c240_i32_63 dim 1 : vector<8x256xf32>, i32 -> vector<8x256xf32>
    %cst_64 = arith.constant 0.000000e+00 : f32
    %174 = vector.shape_cast %42 : vector<1x256xi1> to vector<1x256xi1>
    %175 = vector.broadcast %174 : vector<1x256xi1> to vector<8x256xi1>
    %176 = vector.broadcast %cst_64 : f32 to vector<8x256xf32>
    %177 = arith.select %175, %173, %176 : vector<8x256xi1>, vector<8x256xf32>
    %c239_i32_65 = arith.constant 239 : i32
    %178 = tpu.dynamic_rotate %142 by %c239_i32_65 dim 1 : vector<8x256xf32>, i32 -> vector<8x256xf32>
    %cst_66 = arith.constant 0.000000e+00 : f32
    %179 = vector.shape_cast %46 : vector<1x256xi1> to vector<1x256xi1>
    %180 = vector.broadcast %179 : vector<1x256xi1> to vector<8x256xi1>
    %181 = vector.broadcast %cst_66 : f32 to vector<8x256xf32>
    %182 = arith.select %180, %178, %181 : vector<8x256xi1>, vector<8x256xf32>
    %183 = tpu.concatenate %147, %152, %157, %162, %142, %167, %172, %177, %182 in 0 : vector<8x256xf32>, vector<8x256xf32>, vector<8x256xf32>, vector<8x256xf32>, vector<8x256xf32>, vector<8x256xf32>, vector<8x256xf32>, vector<8x256xf32>, vector<8x256xf32> -> vector<72x256xf32>
    %c0_67 = arith.constant 0 : index
    %c0_68 = arith.constant 0 : index
    %184 = vector.load %arg6[%c0_67, %c0_68] : memref<8x72xf32, #tpu.memory_space<vmem>>, vector<8x72xf32>
    %cst_69 = arith.constant dense<0.000000e+00> : vector<8x256xf32>
    %185 = tpu.matmul %184, %183, %cst_69 {dimension_numbers = #tpu.dot_dimension_numbers<[1], [0], [0], [1], [0, 0, 1, 1], [], []>} : vector<8x72xf32>, vector<72x256xf32>, vector<8x256xf32> -> vector<8x256xf32>
    %c0_70 = arith.constant 0 : index
    %c0_71 = arith.constant 0 : index
    %186 = vector.load %arg7[%c0_70, %c0_71] : memref<8x1xf32, #tpu.memory_space<vmem>>, vector<8x1xf32>
    %187 = vector.broadcast %186 : vector<8x1xf32> to vector<8x256xf32>
    %188 = arith.addf %185, %187 : vector<8x256xf32>
    %c0_72 = arith.constant 0 : index
    %c0_73 = arith.constant 0 : index
    %189 = vector.load %arg8[%c0_72, %c0_73] : memref<8x8xf32, #tpu.memory_space<vmem>>, vector<8x8xf32>
    %cst_74 = arith.constant dense<0.000000e+00> : vector<8x256xf32>
    %190 = tpu.matmul %189, %1, %cst_74 {dimension_numbers = #tpu.dot_dimension_numbers<[1], [0], [0], [1], [0, 0, 1, 1], [], []>} : vector<8x8xf32>, vector<8x256xf32>, vector<8x256xf32> -> vector<8x256xf32>
    %191 = arith.addf %188, %190 : vector<8x256xf32>
    %cst_75 = arith.constant 0.000000e+00 : f32
    %192 = vector.broadcast %cst_75 : f32 to vector<8x256xf32>
    %193 = arith.maximumf %191, %192 : vector<8x256xf32>
    %c0_76 = arith.constant 0 : index
    %c0_77 = arith.constant 0 : index
    %c0_78 = arith.constant 0 : index
    %194 = vector.load %arg9[%c0_76, %c0_77, %c0_78] : memref<1x8x256xf32, #tpu.memory_space<vmem>>, vector<1x8x256xf32>
    %195 = vector.shape_cast %194 : vector<1x8x256xf32> to vector<8x256xf32>
    %196 = vector.shape_cast %193 : vector<8x256xf32> to vector<1x8x256xf32>
    tpu.vector_store %arg9[%c0_76, %c0_77, %c0_78], %196 {strides = array<i32>} : memref<1x8x256xf32, #tpu.memory_space<vmem>>, vector<1x8x256xf32>,
    return
  }
  func.func @transform_0(%arg0: i32) -> (i32, i32, i32) {
    %c0_i32 = arith.constant 0 : i32
    %c0_i32_0 = arith.constant 0 : i32
    %c0_i32_1 = arith.constant 0 : i32
    return %arg0, %c0_i32, %c0_i32_0 : i32, i32, i32
  }
  func.func @transform_1(%arg0: i32) -> (i32, i32) {
    %c0_i32 = arith.constant 0 : i32
    %c0_i32_0 = arith.constant 0 : i32
    %c0_i32_1 = arith.constant 0 : i32
    return %c0_i32, %c0_i32_0 : i32, i32
  }
  func.func @transform_2(%arg0: i32) -> (i32, i32) {
    %c0_i32 = arith.constant 0 : i32
    %c0_i32_0 = arith.constant 0 : i32
    %c0_i32_1 = arith.constant 0 : i32
    return %c0_i32, %c0_i32_0 : i32, i32
  }
  func.func @transform_3(%arg0: i32) -> (i32, i32) {
    %c0_i32 = arith.constant 0 : i32
    %c0_i32_0 = arith.constant 0 : i32
    %c0_i32_1 = arith.constant 0 : i32
    return %c0_i32, %c0_i32_0 : i32, i32
  }
  func.func @transform_4(%arg0: i32) -> (i32, i32) {
    %c0_i32 = arith.constant 0 : i32
    %c0_i32_0 = arith.constant 0 : i32
    %c0_i32_1 = arith.constant 0 : i32
    return %c0_i32, %c0_i32_0 : i32, i32
  }
  func.func @transform_5(%arg0: i32) -> (i32, i32) {
    %c0_i32 = arith.constant 0 : i32
    %c0_i32_0 = arith.constant 0 : i32
    %c0_i32_1 = arith.constant 0 : i32
    return %c0_i32, %c0_i32_0 : i32, i32
  }
  func.func @transform_6(%arg0: i32) -> (i32, i32) {
    %c0_i32 = arith.constant 0 : i32
    %c0_i32_0 = arith.constant 0 : i32
    %c0_i32_1 = arith.constant 0 : i32
    return %c0_i32, %c0_i32_0 : i32, i32
  }
  func.func @transform_7(%arg0: i32) -> (i32, i32) {
    %c0_i32 = arith.constant 0 : i32
    %c0_i32_0 = arith.constant 0 : i32
    %c0_i32_1 = arith.constant 0 : i32
    return %c0_i32, %c0_i32_0 : i32, i32
  }
  func.func @transform_8(%arg0: i32) -> (i32, i32, i32) {
    %c0_i32 = arith.constant 0 : i32
    %c0_i32_0 = arith.constant 0 : i32
    %c0_i32_1 = arith.constant 0 : i32
    return %arg0, %c0_i32, %c0_i32_0 : i32, i32, i32
  }
}

</mosaic_0001>

<bundles_post_ra>
// kernel: tpu_custom_call.1
= control target key start
LH: loop header
LB: loop body
LE: loop exit
PB: predicated region body
PF: predicated region fallthrough
CT: control target
= control target key end

     0   :  { %13 = vsyncpa [#allocation3], 0  ;;  %s1995_s0 = inlined_call_operand.hbm [shape: f32[2,8,256], index: 0, kind: input, shape index: {}]   ;;  %s1996_s1 = inlined_call_operand.vmem [shape: f32[8,72], index: 1, kind: input, shape index: {}]   ;;  %s1997_s2 = inlined_call_operand.vmem [shape: f32[8,1], index: 2, kind: input, shape index: {}]   ;;  %s1998_s3 = inlined_call_operand.vmem [shape: f32[8,72], index: 3, kind: input, shape index: {}]   ;;  %s1999_s4 = inlined_call_operand.vmem [shape: f32[8,1], index: 4, kind: input, shape index: {}]   ;;  %s2000_s5 = inlined_call_operand.vmem [shape: f32[8,72], index: 5, kind: input, shape index: {}]   ;;  %s2001_s6 = inlined_call_operand.vmem [shape: f32[8,1], index: 6, kind: input, shape index: {}]   ;;  %s2002_s7 = inlined_call_operand.vmem [shape: f32[8,8], index: 7, kind: input, shape index: {}]   ;;  %s2003_s8 = inlined_call_operand.hbm [shape: f32[2,8,256], index: 8, kind: output, shape index: {}]  }
   0x1   :  { %15 = vsyncpa [#allocation3 + $0x1], 0 }
   0x2   :  { %16 = vsyncpa [#allocation4], 0 }
   0x3   :  { %18 = vsyncpa [#allocation4 + $0x1], 0  ;;  %s1496_s27 = smov 0   ;;  %s1498_s28 = smov 0  }
   0x4   :  { %s1500_s29 = smov 0   ;;  %s1502_s30 = smov 0  }
   0x5 LB: > { %s1517_s9 = sadd.s32 4294967295, %s1436_s30   ;;  %s1038_s10 = sadd.s32 4294967294, %s1436_s30   ;;  %s1436_s30 = sphi %s1502_s30, %s2081_s30   ;;  %s1432_s29 = sphi %s1500_s29, %s2080_s29   ;;  %s1428_s28 = sphi %s1498_s28, %s2079_s28   ;;  %s1424_s27 = sphi %s1496_s27, %s2078_s27  }
   0x6   : > { %s1521_s11 = sadd.s32 1, %s1436_s30   ;;  %s31_s12 = sadd.s32 1, %s1432_s29 }
   0x7   : > { %s28_s13 = ssub.s32 %s1436_s30, %s1521_s11  ;;  %p38_p0 = scmp.ne.s32.totalorder %s1432_s29, %s1428_s28 }
   0x8   : > { %p29_p1 = scmp.eq.s32.totalorder %s28_s13, 0  ;;  %p39_p2 = scmp.eq.s32.totalorder %s1436_s30, 0 }
   0x9   : > { %p44_p3 = scmp.ne.s32.totalorder %s1428_s28, %s1424_s27  ;;  %p45_p4 = scmp.eq.s32.totalorder %s1517_s9, 0 }
   0xa   : > { %s1533_s14 = scalar_select %p29_p1, %s1432_s29, %s31_s12  }
   0xb   : > { %p1535_p5 = por %p39_p2, %p38_p0  ;;  %p1539_p6 = por %p45_p4, %p44_p3 }
   0xc   : > { %p215_p7 = scmp.eq.s32.totalorder %s1517_s9, 1  ;;  %p221_p8 = scmp.eq.s32.totalorder %s1038_s10, 1 }
   0xd   : > { %p1188_p10 = scmp.lt.s32.totalorder %s1436_s30, 2  ;;  %s262_s19 = sand.u32 1, %s1432_s29  }
   0xe   : > { %p1546_p11 = por %p215_p7, %p38_p0  ;;  %p1550_p12 = por %p221_p8, %p44_p3 }
   0xf   : > { %s1098_s20 = sshll.u32 %s1436_s30, 8  ;;  %s1041_s21 = sshll.u32 %s262_s19, 4 }
  0x10   : > { %s2014_s17 = scalar_select %p1546_p11, 1, 0 }
  0x11   : > { %s2015_s18 = scalar_select %p1550_p12, 1, 0 }
  0x12   : > { %s1559_s24 = scalar_lea.hbm %s1995_s0, %s1098_s20  ;;  %s266_s25 = scalar_lea.vmem [#allocation2], %s1041_s21 }
  0x13   : > { %s274_s26 = sshll.u32 %s266_s25, 4  ;;  %p1563_p13 = pnand %p1188_p10, %p1535_p5  ;;  %s1567_s26 = int_to_ptr.vmem [resolvable:$true] %s274_s26 }
  0x14   : > { %s263_s12 = scalar_lea.sflag [#allocation3], %s262_s19  ;;  %s1340_s13 = scalar_lea.hbm %s1559_s24, 256 }
  0x15   : > { %p1341_p2 = scmp.ne.s32.totalorder %s1559_s24, %s1340_s13  ;;  %p1342_p3 = pneg %p1563_p13 }
  0x16   : > { %s1345_s21 = scalar_lea.hbm %s1995_s0, 512  ;;  %p1346_p5 = scmp.lt.u32.totalorder %s1559_s24, %s1995_s0 }
  0x17   : > { %p1343_p4 = pnand %p1342_p3, %p1341_p2  ;;  %p1347_p8 = scmp.lt.u32.totalorder %s1345_s21, %s1340_s13 }
  0x18   : > { %p1349_p9 = scmp.lt.u32.totalorder %s1340_s13, %s1559_s24 }
  0x19   : > { %p1344_p7 = pneg %p1343_p4  ;;  %p1348_p10 = por %p1347_p8, %p1346_p5 }
  0x1b   : > { %p1350_p0 = por %p1349_p9, %p1348_p10 }
  0x1d   : > { %p1351_p1 = pnand %p1350_p0, %p1344_p7 }
  0x1f   : > { %1354 = shalt.err (!%p1351_p1)
}
  0x20   : > { %s1355_s19 = scalar_lea.vmem %s1567_s26, 256  ;;  %s1438_s25 = smov [#allocation2]  }
  0x21   : > { %p1356_p2 = scmp.ne.s32.totalorder %s1567_s26, %s1355_s19  ;;  %s1360_s15 = sshll.u32 %s1438_s25, 4  ;;  %s1361_s15 = int_to_ptr.vmem [resolvable:$false] %s1360_s15 }
  0x22   : > { %s1362_s20 = scalar_lea.vmem %s1361_s15, 512  ;;  %p1363_p11 = scmp.lt.s32.totalorder %s1567_s26, %s1361_s15 }
  0x23   : > { %p1358_p4 = pnand %p1356_p2, %p1342_p3  ;;  %p1364_p5 = scmp.lt.s32.totalorder %s1362_s20, %s1355_s19 }
  0x25   : > { %p1359_p12 = pneg %p1358_p4  ;;  %p1365_p8 = por %p1364_p5, %p1363_p11 }
  0x27   : > { %p1366_p9 = pnand %p1365_p8, %p1359_p12 }
  0x29   : > { %1369 = shalt.err (!%p1366_p9)
}
  0x2a   : > { %1183 = dma.hbm_to_vmem [thread:$0]  (!%p1563_p13), %s1559_s24, 256, %s1567_s26, %s263_s12  }
  0x2b   : > { %p2017_p0 = scmp.lt.s32.totalorder %s1436_s30, 3  ;;  %p2018_p1 = scmp.ge.s32.totalorder %s1436_s30, 1 }
  0x2d   : > { %p280_p3 = pnand %p2018_p1, %p2017_p0 }
  0x2e   : > { %s1601_s13 = sand.u32 (!%p280_p3), 1, %s1428_s28  }
  0x2f   : > { %283 = sbr.rel (%p280_p3) target bundleno = 1153 (0x481), region = 52  ;;  %s1045_s21 = sshll.u32 (!%p280_p3), %s1601_s13, 4 }
  0x30   : > { %s286_s22 = scalar_lea.sflag (!%p280_p3), [#allocation3], %s1601_s13  ;;  %s289_s10 = scalar_lea.vmem (!%p280_p3), [#allocation2], %s1045_s21 }
  0x36   : > { %1415 = dma.done.wait (%p1539_p6), %s286_s22, 256  }
  0x37   : > { %1417 = vsyncadd (%p1539_p6), %s286_s22, 4294967040  ;;  %v1611_v0 = vld [vmem:[%s289_s10] sm:$0xff]  ;;  %v1613_v1 = vld [vmem:[%s289_s10 + $0x8] sm:$0xff]  ;;  %s1439_s24 = smov 15   ;;  %s1440_s26 = smov 17   ;;  %v1447_v3 = vmov 0.0   ;;  %v324_v6 = vlaneseq }
  0x38   : > { %v1243_v2 = vpack.i.bf16 %v1613_v1, %v1611_v0  ;;  %s1441_s12 = smov 1   ;;  %s1442_s23 = smov 16   ;;  %570 = vmatprep.mubr.f32.mxu1 %v1447_v3  ;;  %864 = vmatprep.mubr.f32.mxu0 %v1447_v3  ;;  %v496_v4 = vld [vmem:[%s1997_s2] sm:$0xff]  ;;  %v1448_v5 = vmov 0   ;;  %vm1449_vm11 = vmmov 1  }
  0x39   : > { %s1443_s16 = smov 127   ;;  %s1444_s19 = smov 113   ;;  %1268 = vset.pattern.permute.xlu1 %v1448_v5  ;;  %1339 = vset.pattern.permute.xlu0 %v1448_v5  ;;  %v1633_v7 = vand.u32 127, %v324_v6  ;;  %v495_v15 = vld [vmem:[%s1996_s1] sm:$0xff] }
  0x3a   : > { %1244 = vrot.lane.b32.xlu1 %v1243_v2, %s1439_s24  ;;  %1234 = vrot.lane.b32.xlu0 %v1243_v2, %s1440_s26  ;;  %s1445_s25 = smov 112   ;;  %s1446_s15 = smov 111   ;;  %v790_v5 = vld [vmem:[%s2000_s5] sm:$0xff] }
  0x3b   : > { %v326_v8 = vadd.s32 128, %v1633_v7  ;;  %v331_v9 = vand.u32 15, %v1633_v7  ;;  %v355_v10 = vand.u32 255, %v1633_v7  ;;  %vm2005_vm2 = vcmp.lt.s32.totalorder %v1633_v7, 15  ;;  %v871_v6 = vld [vmem:[%s2002_s7] sm:$0xff]  ;;  %s954_s20 = scalar_lea.sflag [#allocation4], %s1601_s13 }
  0x3c   : > { %vm2006_vm3 = vcmp.lt.s32.totalorder %v1633_v7, 1  ;;  %vm2008_vm4 = vcmp.lt.s32.totalorder %v1633_v7, 17  ;;  %vm2011_vm7 = vcmp.lt.s32.totalorder %v1633_v7, 16  ;;  %vm2007_vm13 = vcmp.lt.s32.totalorder %v1633_v7, 127  ;;  %p2075_p11 = scmp.ne.s32.totalorder %s2014_s17, 0 }
  0x3d   : > { %v338_v13 = vand.u32 15, %v326_v8  ;;  %vm1638_vm0 = vcmp.ne.s32.totalorder %v331_v9, 0  ;;  %vm1642_vm1 = vcmp.ge.s32.totalorder %v355_v10, 16  ;;  %vm1666_vm9 = vcmp.ne.s32.totalorder %v331_v9, 15 }
  0x3e   : > { %1249 = vrot.lane.b32.xlu1 %v1243_v2, %s1441_s12  ;;  %1239 = vrot.lane.b32.xlu0 %v1243_v2, %s1442_s23  ;;  %vm383_vm5 = vmand %vm1642_vm1, %vm1638_vm0  ;;  %v362_v32 = vand.u32 255, %v326_v8 }
  0x3f   : > { %vm1653_vm6 = vcmp.ne.s32.totalorder %v338_v13, 0  ;;  %vm1658_vm8 = vcmp.ne.s32.totalorder %v338_v13, 15  ;;  %vm1672_vm10 = vmpackc.low %vm1642_vm1, %vm383_vm5  ;;  %vm2010_vm5 = vcmp.lt.s32.totalorder %v1633_v7, 113 }
  0x40   : > { %vm1683_vm12 = vmpackc.low %vm1449_vm11, %vm1653_vm6 }
  0x41   : > { %vm1696_vm14 = vmpackc.low %vm1653_vm6, %vm1658_vm8 }
  0x42   : > { %1254 = vrot.lane.b32.xlu0 %v1243_v2, %s1443_s16  ;;  %1259 = vrot.lane.b32.xlu1 %v1243_v2, %s1444_s19  ;;  %vm385_vm15 = vmand %vm1642_vm1, %vm1666_vm9  ;;  %vm1715_vm1 = vcmp.lt.s32.totalorder %v362_v32, 240 }
  0x46   : > { %1264 = vrot.lane.b32.xlu0 %v1243_v2, %s1445_s25  ;;  %482 = vrot.lane.b32.xlu1 %v1611_v0, %s1446_s15 }
  0x4a   : > { %484 = vrot.lane.b32.xlu0 %v1613_v1, %s1446_s15  ;;  %499 = vperm.xlu1 %1268, %v496_v4  }
  0xac   : > { %v1245_v11 = vpop.permute.xlu1 %1244  ;;  %v1235_v12 = vpop.permute.xlu0 %1234 }
  0xad   : > { %v1247_v16 = vunpack.i.h.bf16 %v1245_v11  ;;  %v1246_v17 = vunpack.i.l.bf16 %v1245_v11  ;;  %v1237_v18 = vunpack.i.h.bf16 %v1235_v12  ;;  %v1236_v19 = vunpack.i.l.bf16 %v1235_v12 }
  0xaf   : > { %v422_v28 = vsel %vm2005_vm2, %v1246_v17, %v1247_v16  ;;  %v396_v29 = vsel %vm2008_vm4, %v1236_v19, %v1237_v18  ;;  %v397_v36 = vsel %vm2008_vm4, %v1237_v18, %v1236_v19  ;;  %v423_v47 = vsel %vm2005_vm2, %v1247_v16, %v1246_v17  ;;  %vm1726_vm2 = vmpackc.low %vm1638_vm0, %vm385_vm15 }
  0xb0   : > { %v1250_v20 = vpop.permute.xlu1 %1249  ;;  %v1240_v21 = vpop.permute.xlu0 %1239  ;;  %vm388_vm15 = vmand %vm1715_vm1, %vm1653_vm6 }
  0xb1   : > { %v1252_v24 = vunpack.i.h.bf16 %v1250_v20  ;;  %v1251_v25 = vunpack.i.l.bf16 %v1250_v20  ;;  %v1242_v26 = vunpack.i.h.bf16 %v1240_v21  ;;  %v1241_v27 = vunpack.i.l.bf16 %v1240_v21  ;;  %vm1758_vm6 = vmpackc.low %vm1666_vm9, %vm1449_vm11 }
  0xb2   : > { %vm1764_vm4 = vmpackc.low %vm1715_vm1, %vm388_vm15 }
  0xb3   : > { %v435_v33 = vsel %vm2006_vm3, %v1251_v25, %v1252_v24  ;;  %v409_v34 = vsel %vm2011_vm7, %v1241_v27, %v1242_v26  ;;  %v410_v37 = vsel %vm2011_vm7, %v1242_v26, %v1241_v27  ;;  %v436_v48 = vsel %vm2006_vm3, %v1252_v24, %v1251_v25  ;;  %vm1786_vm15 = vmand %vm1715_vm1, %vm1658_vm8  ;;  %v644_v24 = vld [vmem:[%s1999_s4] sm:$0xff] }
  0xb4   : > { %v1100_v38 = vpack.c.bf16 %v409_v34, %v396_v29  ;;  %v1103_v39 = vpack.c.bf16 %v410_v37, %v397_v36  ;;  %v1255_v40 = vpop.permute.xlu0 %1254  ;;  %v1260_v42 = vpop.permute.xlu1 %1259  ;;  %v1106_v49 = vpack.c.bf16 %v435_v33, %v422_v28  ;;  %vm2009_vm3 = vcmp.lt.s32.totalorder %v1633_v7, 112 }
  0xb5   : > { %v1257_v43 = vunpack.i.h.bf16 %v1255_v40  ;;  %v1256_v44 = vunpack.i.l.bf16 %v1255_v40  ;;  %v1262_v45 = vunpack.i.h.bf16 %v1260_v42  ;;  %v1261_v46 = vunpack.i.l.bf16 %v1260_v42 }
  0xb6   : > { %1102 = vmatprep.subr.msk.bf16.mxu1 %vm1683_vm12, %v1100_v38  ;;  %v1109_v56 = vpack.c.bf16 %v436_v48, %v423_v47  ;;  %vm2051_vm1 = vcmp.lt.s32.totalorder %v1633_v7, 1 }
  0xb7   : > { %1105 = vmatpush1.bf16.msk.msra.mxu1 %vm1672_vm10, %v1103_v39  ;;  %v449_v50 = vsel %vm2007_vm13, %v1257_v43, %v1256_v44  ;;  %v448_v52 = vsel %vm2007_vm13, %v1256_v44, %v1257_v43  ;;  %v462_v57 = vsel %vm2010_vm5, %v1262_v45, %v1261_v46  ;;  %vm1736_vm13 = vmpackc.low %vm1658_vm8, %vm1449_vm11  ;;  %v461_v63 = vsel %vm2010_vm5, %v1261_v46, %v1262_v45 }
  0xb8   : > { %v1112_v53 = vpack.c.bf16 %v449_v50, %v1613_v1  ;;  %1108 = vmatprep.subr.msk.bf16.mxu1 %vm1696_vm14, %v1106_v49  ;;  %v1265_v55 = vpop.permute.xlu0 %1264  ;;  %v1115_v61 = vpack.c.bf16 %v448_v52, %v1611_v0  ;;  %v483_v8 = vpop.permute.xlu1 %482  ;;  %vm1776_vm5 = vmpackc.low %vm1449_vm11, %vm1638_vm0  ;;  %vm502_vm0 = vcmask 588800   ;;  %vm2049_vm8 = vcmp.lt.s32.totalorder %v1633_v7, 17 }
  0xb9   : > { %v1267_v58 = vunpack.i.h.bf16 %v1265_v55  ;;  %v1266_v59 = vunpack.i.l.bf16 %v1265_v55  ;;  %vm2050_vm11 = vmmov %vm2049_vm8 }
  0xbb   : > { %1111 = vmatpush1.bf16.msk.msra.mxu1 %vm1726_vm2, %v1109_v56  ;;  %v475_v62 = vsel %vm2009_vm3, %v1267_v58, %v1266_v59  ;;  %v474_v2 = vsel %vm2009_vm3, %v1266_v59, %v1267_v58  ;;  %vm486_vm3 = vcmp.lt.s32.totalorder %v1633_v7, 111 }
  0xbc   : > { %v1118_v4 = vpack.c.bf16 %v475_v62, %v462_v57  ;;  %1114 = vmatprep.subr.msk.bf16.mxu1 %vm1736_vm13, %v1112_v53  ;;  %v485_v9 = vpop.permute.xlu0 %484  ;;  %v1121_v10 = vpack.c.bf16 %v474_v2, %v461_v63 }
  0xbd   : > { %v488_v12 = vsel %vm486_vm3, %v485_v9, %v483_v8  ;;  %v487_v14 = vsel %vm486_vm3, %v483_v8, %v485_v9 }
  0xbf   : > { %1117 = vmatpush1.bf16.msk.msra.mxu1 %vm1758_vm6, %v1115_v61 }
  0xc0   : > { %1120 = vmatprep.subr.msk.bf16.mxu1 %vm1764_vm4, %v1118_v4 }
  0xc3   : > { %1123 = vmatpush1.bf16.msk.msra.mxu1 %vm1776_vm5, %v1121_v10 }
  0xc4   : > { %1059 = vmatprep.subr.msk.mxu1 %vm1786_vm15, %v488_v12 }
  0xc7   : > { %1060 = vmatpush1.msk.msra.mxu1 %vm1666_vm9, %v487_v14 }
  0xc8   : > { %1061 = vmatmul.mubr.msk.f32.vlgmr.msra.gmra.mrb[0].mxu1 %vm502_vm0, %v495_v15 }
  0xc9   : > { %717 = vmatprep.mubr.f32.mxu1 %v1447_v3  ;;  %v500_v16 = vpop.permute.xlu1 %499 }
 0x19b   : > { %v572_v17 = vpop.f32.mrb[0].mxu1 }
 0x19c   : > { %v573_v18 = vadd.f32 %v572_v17, %v500_v16  ;;  %v574_v19 = vpop.f32.mrb[1].mxu1 }
 0x19d   : > { %v575_v20 = vadd.f32 %v574_v19, %v500_v16 }
 0x19e   : > { %v577_v21 = vmax.f32 %v573_v18, 0.0 }
 0x19f   : > { %v578_v22 = vmax.f32 %v575_v20, 0.0 }
 0x1a1   : > { %v1274_v23 = vpack.i.bf16 %v578_v22, %v577_v21 }
 0x1a3   : > { %1275 = vrot.lane.b32.xlu1 %v1274_v23, %s1442_s23  ;;  %1270 = vrot.lane.b32.xlu0 %v1274_v23, %s1440_s26 }
 0x1a7   : > { %1285 = vrot.lane.b32.xlu1 %v1274_v23, %s1441_s12  ;;  %1280 = vrot.lane.b32.xlu0 %v1274_v23, %s1439_s24 }
 0x1ab   : > { %1295 = vrot.lane.b32.xlu1 %v1274_v23, %s1444_s19  ;;  %1290 = vrot.lane.b32.xlu0 %v1274_v23, %s1443_s16 }
 0x1af   : > { %635 = vrot.lane.b32.xlu1 %v577_v21, %s1446_s15  ;;  %1300 = vrot.lane.b32.xlu0 %v1274_v23, %s1445_s25 }
 0x1b3   : > { %647 = vperm.xlu1 %1268, %v644_v24   ;;  %637 = vrot.lane.b32.xlu0 %v578_v22, %s1446_s15 }
 0x215   : > { %v1276_v25 = vpop.permute.xlu1 %1275  ;;  %v1271_v26 = vpop.permute.xlu0 %1270 }
 0x216   : > { %v1278_v27 = vunpack.i.h.bf16 %v1276_v25  ;;  %v1277_v28 = vunpack.i.l.bf16 %v1276_v25  ;;  %v1273_v29 = vunpack.i.h.bf16 %v1271_v26  ;;  %v1272_v32 = vunpack.i.l.bf16 %v1271_v26 }
 0x218   : > { %v591_v33 = vsel %vm2011_vm7, %v1277_v28, %v1278_v27  ;;  %v592_v34 = vsel %vm2011_vm7, %v1278_v27, %v1277_v28  ;;  %v583_v36 = vsel %vm2049_vm8, %v1272_v32, %v1273_v29  ;;  %v584_v37 = vsel %vm2050_vm11, %v1273_v29, %v1272_v32  ;;  %vm2052_vm7 = vmmov %vm2051_vm1 }
 0x219   : > { %v1124_v38 = vpack.c.bf16 %v591_v33, %v583_v36  ;;  %v1127_v39 = vpack.c.bf16 %v592_v34, %v584_v37  ;;  %v1286_v40 = vpop.permute.xlu1 %1285  ;;  %v1281_v42 = vpop.permute.xlu0 %1280  ;;  %vm2053_vm8 = vcmp.lt.s32.totalorder %v1633_v7, 15  ;;  %v791_v33 = vld [vmem:[%s2001_s6] sm:$0xff] }
 0x21a   : > { %v1288_v43 = vunpack.i.h.bf16 %v1286_v40  ;;  %v1287_v44 = vunpack.i.l.bf16 %v1286_v40  ;;  %v1283_v45 = vunpack.i.h.bf16 %v1281_v42  ;;  %v1282_v46 = vunpack.i.l.bf16 %v1281_v42  ;;  %vm2054_vm11 = vmmov %vm2053_vm8 }
 0x21b   : > { %1126 = vmatprep.subr.msk.bf16.mxu1 %vm1683_vm12, %v1124_v38 }
 0x21c   : > { %v607_v47 = vsel %vm2051_vm1, %v1287_v44, %v1288_v43  ;;  %v608_v48 = vsel %vm2052_vm7, %v1288_v43, %v1287_v44  ;;  %v599_v49 = vsel %vm2053_vm8, %v1282_v46, %v1283_v45  ;;  %v600_v50 = vsel %vm2054_vm11, %v1283_v45, %v1282_v46  ;;  %1129 = vmatpush1.bf16.msk.msra.mxu1 %vm1672_vm10, %v1127_v39 }
 0x21d   : > { %v1130_v51 = vpack.c.bf16 %v607_v47, %v599_v49  ;;  %v1133_v52 = vpack.c.bf16 %v608_v48, %v600_v50  ;;  %v1296_v53 = vpop.permute.xlu1 %1295  ;;  %v1291_v55 = vpop.permute.xlu0 %1290  ;;  %vm2055_vm7 = vcmp.lt.s32.totalorder %v1633_v7, 127  ;;  %vm2057_vm8 = vcmp.lt.s32.totalorder %v1633_v7, 113 }
 0x21e   : > { %v1293_v56 = vunpack.i.h.bf16 %v1291_v55  ;;  %v1292_v57 = vunpack.i.l.bf16 %v1291_v55  ;;  %v1298_v58 = vunpack.i.h.bf16 %v1296_v53  ;;  %v1297_v59 = vunpack.i.l.bf16 %v1296_v53  ;;  %vm2056_vm1 = vmmov %vm2055_vm7 }
 0x21f   : > { %1132 = vmatprep.subr.msk.bf16.mxu1 %vm1696_vm14, %v1130_v51  ;;  %vm2058_vm11 = vmmov %vm2057_vm8 }
 0x220   : > { %v615_v61 = vsel %vm2055_vm7, %v1292_v57, %v1293_v56  ;;  %v616_v62 = vsel %vm2056_vm1, %v1293_v56, %v1292_v57  ;;  %1135 = vmatpush1.bf16.msk.msra.mxu1 %vm1726_vm2, %v1133_v52  ;;  %v623_v10 = vsel %vm2057_vm8, %v1297_v59, %v1298_v58  ;;  %v624_v12 = vsel %vm2058_vm11, %v1298_v58, %v1297_v59 }
 0x221   : > { %v1136_v63 = vpack.c.bf16 %v616_v62, %v578_v22  ;;  %v1139_v2 = vpack.c.bf16 %v615_v61, %v577_v21  ;;  %v1301_v4 = vpop.permute.xlu0 %1300  ;;  %vm2059_vm7 = vcmp.lt.s32.totalorder %v1633_v7, 112  ;;  %v636_v19 = vpop.permute.xlu1 %635  ;;  %v643_v21 = vld [vmem:[%s1998_s3] sm:$0xff]  ;;  %vm2061_vm8 = vcmp.lt.s32.totalorder %v1633_v7, 17 }
 0x222   : > { %v1303_v8 = vunpack.i.h.bf16 %v1301_v4  ;;  %v1302_v9 = vunpack.i.l.bf16 %v1301_v4  ;;  %vm2060_vm1 = vmmov %vm2059_vm7  ;;  %vm2062_vm11 = vcmp.lt.s32.totalorder %v1633_v7, 16 }
 0x223   : > { %1138 = vmatprep.subr.msk.bf16.mxu1 %vm1736_vm13, %v1136_v63 }
 0x224   : > { %v631_v14 = vsel %vm2059_vm7, %v1302_v9, %v1303_v8  ;;  %v632_v15 = vsel %vm2060_vm1, %v1303_v8, %v1302_v9  ;;  %1141 = vmatpush1.bf16.msk.msra.mxu1 %vm1758_vm6, %v1139_v2  ;;  %vm2063_vm7 = vmmov %vm2061_vm8 }
 0x225   : > { %v1142_v16 = vpack.c.bf16 %v632_v15, %v624_v12  ;;  %v1145_v17 = vpack.c.bf16 %v631_v14, %v623_v10  ;;  %v638_v18 = vpop.permute.xlu0 %637  ;;  %vm2064_vm1 = vmmov %vm2062_vm11 }
 0x226   : > { %v640_v20 = vsel %vm486_vm3, %v638_v18, %v636_v19  ;;  %v639_v22 = vsel %vm486_vm3, %v636_v19, %v638_v18 }
 0x227   : > { %1144 = vmatprep.subr.msk.bf16.mxu1 %vm1764_vm4, %v1142_v16 }
 0x228   : > { %1147 = vmatpush1.bf16.msk.msra.mxu1 %vm1776_vm5, %v1145_v17 }
 0x229   : > { %1074 = vmatprep.subr.msk.mxu1 %vm1786_vm15, %v640_v20 }
 0x22c   : > { %1075 = vmatpush1.msk.msra.mxu1 %vm1666_vm9, %v639_v22 }
 0x22d   : > { %1076 = vmatmul.mubr.msk.f32.vlgmr.msra.gmra.mrb[2].mxu1 %vm502_vm0, %v643_v21 }
 0x232   : > { %v648_v23 = vpop.permute.xlu1 %647 }
 0x300   : > { %v719_v24 = vpop.f32.mrb[2].mxu1 }
 0x301   : > { %v720_v25 = vadd.f32 %v719_v24, %v648_v23  ;;  %v721_v26 = vpop.f32.mrb[3].mxu1 }
 0x302   : > { %v722_v27 = vadd.f32 %v721_v26, %v648_v23 }
 0x303   : > { %v724_v28 = vmax.f32 %v720_v25, 0.0 }
 0x304   : > { %v725_v29 = vmax.f32 %v722_v27, 0.0 }
 0x306   : > { %v1309_v32 = vpack.i.bf16 %v725_v29, %v724_v28 }
 0x308   : > { %1310 = vrot.lane.b32.xlu1 %v1309_v32, %s1442_s23  ;;  %1305 = vrot.lane.b32.xlu0 %v1309_v32, %s1440_s26 }
 0x30c   : > { %1320 = vrot.lane.b32.xlu1 %v1309_v32, %s1441_s12  ;;  %1315 = vrot.lane.b32.xlu0 %v1309_v32, %s1439_s24 }
 0x310   : > { %1330 = vrot.lane.b32.xlu1 %v1309_v32, %s1444_s19  ;;  %1325 = vrot.lane.b32.xlu0 %v1309_v32, %s1443_s16  ;;  %s1099_s16 = sshll.u32 %s1517_s9, 8  ;;  %s321_s19 = scalar_lea.vmem [#allocation5], %s1045_s21 }
 0x311   : > { %s1951_s10 = scalar_lea.hbm %s2003_s8, %s1099_s16  ;;  %s1450_s21 = smov [#allocation5]  }
 0x312   : > { %s1374_s24 = sshll.u32 %s1450_s21, 4  ;;  %s1375_s24 = int_to_ptr.vmem [resolvable:$false] %s1374_s24 }
 0x313   : > { %s1376_s26 = scalar_lea.vmem %s1375_s24, 512 }
 0x314   : > { %782 = vrot.lane.b32.xlu1 %v724_v28, %s1446_s15  ;;  %1335 = vrot.lane.b32.xlu0 %v1309_v32, %s1445_s25  ;;  %s968_s25 = sshll.u32 %s321_s19, 4  ;;  %s1953_s25 = int_to_ptr.vmem [resolvable:$true] %s968_s25 }
 0x315   : > { %s1370_s9 = scalar_lea.vmem %s1953_s25, 256  ;;  %p1377_p7 = scmp.lt.s32.totalorder %s1953_s25, %s1375_s24 }
 0x316   : > { %p1371_p6 = scmp.ne.s32.totalorder %s1953_s25, %s1370_s9  ;;  %p1378_p10 = scmp.lt.s32.totalorder %s1376_s26, %s1370_s9 }
 0x318   : > { %794 = vperm.xlu1 %1268, %v791_v33   ;;  %784 = vrot.lane.b32.xlu0 %v725_v29, %s1446_s15  ;;  %p1372_p12 = pnand %p1371_p6, %p2075_p11  ;;  %p1379_p2 = por %p1378_p10, %p1377_p7 }
 0x31a   : > { %p1373_p13 = pneg %p1372_p12 }
 0x31c   : > { %p1380_p4 = pnand %p1379_p2, %p1373_p13 }
 0x37a   : > { %v1311_v34 = vpop.permute.xlu1 %1310  ;;  %v1306_v36 = vpop.permute.xlu0 %1305 }
 0x37b   : > { %v1313_v37 = vunpack.i.h.bf16 %v1311_v34  ;;  %v1312_v38 = vunpack.i.l.bf16 %v1311_v34  ;;  %v1308_v39 = vunpack.i.h.bf16 %v1306_v36  ;;  %v1307_v40 = vunpack.i.l.bf16 %v1306_v36 }
 0x37d   : > { %v730_v42 = vsel %vm2061_vm8, %v1307_v40, %v1308_v39  ;;  %v738_v43 = vsel %vm2062_vm11, %v1312_v38, %v1313_v37  ;;  %v731_v44 = vsel %vm2063_vm7, %v1308_v39, %v1307_v40  ;;  %v739_v45 = vsel %vm2064_vm1, %v1313_v37, %v1312_v38 }
 0x37e   : > { %v1321_v46 = vpop.permute.xlu1 %1320  ;;  %v1316_v47 = vpop.permute.xlu0 %1315  ;;  %v1148_v48 = vpack.c.bf16 %v738_v43, %v730_v42  ;;  %v1151_v49 = vpack.c.bf16 %v739_v45, %v731_v44  ;;  %vm2065_vm8 = vcmp.lt.s32.totalorder %v1633_v7, 1  ;;  %vm2067_vm7 = vcmp.lt.s32.totalorder %v1633_v7, 15 }
 0x37f   : > { %v1323_v50 = vunpack.i.h.bf16 %v1321_v46  ;;  %v1322_v51 = vunpack.i.l.bf16 %v1321_v46  ;;  %v1318_v52 = vunpack.i.h.bf16 %v1316_v47  ;;  %v1317_v53 = vunpack.i.l.bf16 %v1316_v47  ;;  %vm2066_vm11 = vmmov %vm2065_vm8 }
 0x380   : > { %1150 = vmatprep.subr.msk.bf16.mxu0 %vm1683_vm12, %v1148_v48  ;;  %vm2068_vm1 = vmmov %vm2067_vm7  ;;  %vm2069_vm12 = vcmp.lt.s32.totalorder %v1633_v7, 127 }
 0x381   : > { %v754_v55 = vsel %vm2065_vm8, %v1322_v51, %v1323_v50  ;;  %v755_v56 = vsel %vm2066_vm11, %v1323_v50, %v1322_v51  ;;  %v746_v57 = vsel %vm2067_vm7, %v1317_v53, %v1318_v52  ;;  %v747_v58 = vsel %vm2068_vm1, %v1318_v52, %v1317_v53  ;;  %1153 = vmatpush1.bf16.msk.msra.mxu0 %vm1672_vm10, %v1151_v49  ;;  %vm2070_vm8 = vmmov %vm2069_vm12 }
 0x382   : > { %v1154_v59 = vpack.c.bf16 %v754_v55, %v746_v57  ;;  %v1157_v61 = vpack.c.bf16 %v755_v56, %v747_v58  ;;  %v1331_v62 = vpop.permute.xlu1 %1330  ;;  %v1326_v35 = vpop.permute.xlu0 %1325  ;;  %vm2071_vm10 = vcmp.lt.s32.totalorder %v1633_v7, 113  ;;  %vm2073_vm11 = vcmp.lt.s32.totalorder %v1633_v7, 112 }
 0x383   : > { %v1328_v63 = vunpack.i.h.bf16 %v1326_v35  ;;  %v1327_v2 = vunpack.i.l.bf16 %v1326_v35  ;;  %v1333_v4 = vunpack.i.h.bf16 %v1331_v62  ;;  %v1332_v8 = vunpack.i.l.bf16 %v1331_v62  ;;  %vm2074_vm7 = vmmov %vm2073_vm11 }
 0x384   : > { %1156 = vmatprep.subr.msk.bf16.mxu0 %vm1696_vm14, %v1154_v59  ;;  %vm2072_vm14 = vmmov %vm2071_vm10 }
 0x385   : > { %v762_v9 = vsel %vm2069_vm12, %v1327_v2, %v1328_v63  ;;  %v763_v10 = vsel %vm2070_vm8, %v1328_v63, %v1327_v2  ;;  %1159 = vmatpush1.bf16.msk.msra.mxu0 %vm1726_vm2, %v1157_v61  ;;  %v770_v41 = vsel %vm2071_vm10, %v1332_v8, %v1333_v4  ;;  %v771_v17 = vsel %vm2072_vm14, %v1333_v4, %v1332_v8 }
 0x386   : > { %v1160_v31 = vpack.c.bf16 %v763_v10, %v725_v29  ;;  %v1163_v12 = vpack.c.bf16 %v762_v9, %v724_v28  ;;  %v1336_v14 = vpop.permute.xlu0 %1335  ;;  %v783_v60 = vpop.permute.xlu1 %782  ;;  %vm872_vm2 = vcmask 64512  }
 0x387   : > { %v1338_v15 = vunpack.i.h.bf16 %v1336_v14  ;;  %v1337_v16 = vunpack.i.l.bf16 %v1336_v14 }
 0x388   : > { %1162 = vmatprep.subr.msk.bf16.mxu0 %vm1736_vm13, %v1160_v31 }
 0x389   : > { %v778_v18 = vsel %vm2073_vm11, %v1337_v16, %v1338_v15  ;;  %v779_v54 = vsel %vm2074_vm7, %v1338_v15, %v1337_v16  ;;  %1165 = vmatpush1.bf16.msk.msra.mxu0 %vm1758_vm6, %v1163_v12 }
 0x38a   : > { %v1166_v19 = vpack.c.bf16 %v779_v54, %v771_v17  ;;  %v1169_v20 = vpack.c.bf16 %v778_v18, %v770_v41  ;;  %v785_v21 = vpop.permute.xlu0 %784 }
 0x38b   : > { %v787_v22 = vsel %vm486_vm3, %v785_v21, %v783_v60  ;;  %v786_v23 = vsel %vm486_vm3, %v783_v60, %v785_v21 }
 0x38c   : > { %1168 = vmatprep.subr.msk.bf16.mxu0 %vm1764_vm4, %v1166_v19 }
 0x38d   : > { %1171 = vmatpush1.bf16.msk.msra.mxu0 %vm1776_vm5, %v1169_v20 }
 0x38e   : > { %1089 = vmatprep.subr.msk.mxu0 %vm1786_vm15, %v787_v22 }
 0x391   : > { %1090 = vmatpush1.msk.msra.mxu0 %vm1666_vm9, %v786_v23 }
 0x392   : > { %1091 = vmatmul.mubr.msk.f32.vlgmr.msra.gmra.mrb[0].mxu0 %vm502_vm0, %v790_v5  ;;  %876 = vmatprep.subr.mxu0 %v1613_v1 }
 0x393   : > { %877 = vmatpush1.msra.mxu0 %v1611_v0  ;;  %940 = vmatprep.mubr.f32.mxu0 %v1447_v3 }
 0x397   : > { %v795_v7 = vpop.permute.xlu1 %794 }
 0x39a   : > { %1092 = vmatmul.mubr.msk.f32.vlgmr.msra.gmra.mrb[0].mxu0 %vm872_vm2, %v871_v6 }
 0x46d   : > { %v942_v11 = vpop.f32.mrb[0].mxu0 }
 0x46e   : > { %v1172_v30 = vadd.f32 %v942_v11, %v795_v7  ;;  %v944_v13 = vpop.f32.mrb[1].mxu0 }
 0x46f   : > { %v1173_v1 = vadd.f32 %v944_v13, %v795_v7 }
 0x470   : > { %v949_v0 = vmax.f32 %v1172_v30, 0.0 }
 0x471   : > { %v950_v24 = vmax.f32 %v1173_v1, 0.0 }
 0x472   : > { %951 = vst [vmem:[%s321_s19] sm:$0xff] %v949_v0 }
 0x473   : > { %952 = vst [vmem:[%s321_s19 + $0x8] sm:$0xff] %v950_v24 }
 0x474   : > { %1383 = shalt.err (!%p1380_p4)
}
 0x475   : > { %s1384_s13 = scalar_lea.hbm %s1951_s10, 256  ;;  %s1388_s16 = scalar_lea.hbm %s2003_s8, 512 }
 0x476   : > { %p1385_p5 = scmp.ne.s32.totalorder %s1951_s10, %s1384_s13  ;;  %p1389_p0 = scmp.lt.u32.totalorder %s1951_s10, %s2003_s8 }
 0x477   : > { %p1390_p1 = scmp.lt.u32.totalorder %s1388_s16, %s1384_s13  ;;  %p1392_p6 = scmp.lt.u32.totalorder %s1384_s13, %s1951_s10 }
 0x478   : > { %p1386_p8 = pnand %p1385_p5, %p2075_p11 }
 0x479   : > { %p1391_p3 = por %p1390_p1, %p1389_p0 }
 0x47a   : > { %p1387_p9 = pneg %p1386_p8 }
 0x47b   : > { %p1393_p12 = por %p1392_p6, %p1391_p3 }
 0x47d   : > { %p1394_p13 = pnand %p1393_p12, %p1387_p9 }
 0x47f   : > { %1397 = shalt.err (!%p1394_p13)
}
 0x480   : > { %1178 = dma.vmem_to_hbm [thread:$0]  (%p2075_p11), %s1953_s25, 256, %s1951_s10, %s954_s20  }
 0x481 PF: > { %s980_s22 = sand.u32 1, %s1424_s27   ;;  %p2076_p7 = scmp.ne.s32.totalorder %s2015_s18, 0 }
 0x482   : > { %p2077_p10 = scmp.ge.s32.totalorder %s1436_s30, 2  ;;  %s981_s9 = scalar_lea.sflag [#allocation4], %s980_s22 }
 0x484   : > { %p1185_p2 = pnand %p2077_p10, %p2076_p7 }
 0x486   : > { %1419 = dma.done.wait (!%p1185_p2), %s981_s9, 256  }
 0x487   : > { %1421 = vsyncadd (!%p1185_p2), %s981_s9, 4294967040  ;;  %p21_p4 = scmp.ge.s32.totalorder %s1521_s11, 4   ;;  %s2078_s27 = smov %s1428_s28 }
 0x488   : > { %s2079_s28 = smov %s1432_s29  ;;  %s2080_s29 = smov %s1533_s14 }
 0x489   : > { %s2081_s30 = smov %s1521_s11  ;;  %23 = sbr.rel (!%p21_p4) target bundleno = 5 (0x5), region = 97 }
 0x490   :  { %986 = vsyncpa [#allocation3], 1 }
 0x491   :  { %988 = vsyncpa [#allocation3 + $0x1], 1 }
 0x492   :  { %989 = vsyncpa [#allocation4], 1 }
 0x493   :  { %991 = vsyncpa [#allocation4 + $0x1], 1 }

</bundles_post_ra>
